<compile_context>
chip_gen: v5e
topology: v5e:2x2
jax: 0.10.0
libtpu: 0.0.40
codegen_flags: <defaults>
</compile_context>

<pallas_src>
import functools

import jax
import jax.numpy as jnp
from jax import lax
from jax.experimental import pallas as pl
from jax.experimental.pallas import tpu as pltpu


_MASK_VALUE = -1e30


def _round_up(x, m):
    return (x + m - 1) // m * m


def _flash_attn_kernel(q_ref, k_ref, v_ref, o_ref, m_ref, l_ref, acc_ref, *,
                       scale):
    # q_ref  : (1, group, tq, D)  all query heads sharing one KV head
    # k_ref  : (1, tk, D)
    # v_ref  : (1, tk, D)
    # o_ref  : (tq, group*D)  or  (1, tq, group*D)
    # m_ref, l_ref : (group*tq, 1)  f32 scratch
    # acc_ref      : (group*tq, D)  f32 scratch
    qi = pl.program_id(1)
    ki = pl.program_id(2)

    group = q_ref.shape[1]
    tq = q_ref.shape[2]
    d = q_ref.shape[3]
    tk = k_ref.shape[1]
    rows = group * tq

    @pl.when(ki == 0)
    def _init():
        m_ref[...] = jnp.full_like(m_ref, -jnp.inf)
        l_ref[...] = jnp.zeros_like(l_ref)
        acc_ref[...] = jnp.zeros_like(acc_ref)

    # Causal + tq == tk: tile (qi, ki) contributes only when ki <= qi.
    @pl.when(ki <= qi)
    def _compute():
        # Native-dtype MXU inputs; scale folded into Q (cheaper than scaling S).
        q = (q_ref[0] * scale).reshape(rows, d)          # (group*tq, D)
        k = k_ref[0]                                     # (tk, D)
        v = v_ref[0]                                     # (tk, D)

        # QK^T: contract head dim of both operands (no k.T relayout).
        s = lax.dot_general(q, k, (((1,), (1,)), ((), ())),
                            preferred_element_type=jnp.float32)  # (rows, tk)

        # Only the diagonal tile needs the causal mask; tiles below the
        # diagonal are fully unmasked, tiles above were skipped entirely.
        def _mask_diag(sv):
            r = lax.broadcasted_iota(jnp.int32, (rows, tk), 0)
            c = lax.broadcasted_iota(jnp.int32, (rows, tk), 1)
            qpos = r % tq                       # rows are group-major
            return jnp.where(c <= qpos, sv, _MASK_VALUE)

        s = lax.cond(ki == qi, _mask_diag, lambda sv: sv, s)

        # Online softmax update (f32 statistics).
        m_prev = m_ref[...]
        m_new = jnp.maximum(m_prev, jnp.max(s, axis=-1, keepdims=True))
        alpha = jnp.exp(m_prev - m_new)
        p = jnp.exp(s - m_new)                            # (rows, tk) f32

        l_ref[...] = alpha * l_ref[...] + jnp.sum(p, axis=-1, keepdims=True)
        acc_ref[...] = alpha * acc_ref[...] + lax.dot_general(
            p.astype(v.dtype), v, (((1,), (0,)), ((), ())),
            preferred_element_type=jnp.float32)           # (rows, D)
        m_ref[...] = m_new

    # The diagonal tile is the last contributing kv tile: normalize and emit.
    @pl.when(ki == qi)
    def _finalize():
        inv_l = pl.reciprocal(l_ref[...], approx=True)    # (rows, 1)
        o = acc_ref[...] * inv_l                          # (rows, D) f32
        for g in range(group):                            # static unroll
            og = o[g * tq:(g + 1) * tq, :].astype(o_ref.dtype)   # (tq, D)
            if len(o_ref.shape) == 3:
                o_ref[0, :, g * d:(g + 1) * d] = og
            else:
                o_ref[:, g * d:(g + 1) * d] = og


def attention_forward(query, key, value, *, num_heads, head_size, scale,
                      num_kv_heads=None, block_size=128,
                      vmem_limit_bytes=32 * 1024 * 1024):
    """vLLM Attention.forward (prompt path, single sequence, causal).

    query: [T, num_heads * head_size]
    key  : [T, num_kv_heads * head_size]
    value: [T, num_kv_heads * head_size]
    returns: [T, num_heads * head_size]

    block_size: q/kv tile length. 128 is safe on v5e; 256 is a good choice on
    v6e / v7x (larger MXU, plenty of VMEM at these block footprints).
    """
    if num_kv_heads is None:
        num_kv_heads = num_heads
    assert num_heads % num_kv_heads == 0
    assert block_size % 8 == 0
    group = num_heads // num_kv_heads

    T = query.shape[0]
    assert query.shape == (T, num_heads * head_size)
    assert key.shape == (T, num_kv_heads * head_size)
    assert value.shape == (T, num_kv_heads * head_size)

    # Tile length (tq == tk); pad T so tiles divide evenly.  Padded keys are
    # automatically excluded by the causal mask; padded query rows are sliced
    # off at the end.
    t = min(block_size, _round_up(T, 8))
    T_pad = _round_up(T, t)
    n_tiles = T_pad // t

    if T_pad != T:
        pad = ((0, T_pad - T), (0, 0))
        query = jnp.pad(query, pad)
        key = jnp.pad(key, pad)
        value = jnp.pad(value, pad)

    # Head-major layouts for the kernel:
    #   q: [num_kv_heads, group, T_pad, D]   (the GQA group rides with its KV head)
    #   k, v: [num_kv_heads, T_pad, D]
    q = query.reshape(T_pad, num_kv_heads, group, head_size).transpose(1, 2, 0, 3)
    k = key.reshape(T_pad, num_kv_heads, head_size).transpose(1, 0, 2)
    v = value.reshape(T_pad, num_kv_heads, head_size).transpose(1, 0, 2)

    gD = group * head_size
    lane_dense = (gD % 128 == 0)

    if lane_dense:
        # Write the vLLM [T, num_heads*head_size] layout directly:
        # block (t, group*D) at block index (qi, kv_head) is 128-lane dense.
        out_shape = jax.ShapeDtypeStruct((T_pad, num_heads * head_size),
                                         query.dtype)
        out_spec = pl.BlockSpec((t, gD), lambda h, qi, ki: (qi, h))
    else:
        # Fall back to a per-KV-head layout (block last dim == full extent),
        # reshaped once outside the kernel.
        out_shape = jax.ShapeDtypeStruct((num_kv_heads, T_pad, gD),
                                         query.dtype)
        out_spec = pl.BlockSpec((1, t, gD), lambda h, qi, ki: (h, qi, 0))

    kernel = functools.partial(_flash_attn_kernel, scale=scale)

    out = pl.pallas_call(
        kernel,
        out_shape=out_shape,
        grid_spec=pltpu.PrefetchScalarGridSpec(
            num_scalar_prefetch=0,
            grid=(num_kv_heads, n_tiles, n_tiles),
            in_specs=[
                # Q block: whole GQA group for this KV head / q tile;
                # constant across the kv axis -> fetched once per (h, qi).
                pl.BlockSpec((1, group, t, head_size),
                             lambda h, qi, ki: (h, 0, qi, 0)),
                # K/V: clamp the block index for fully-masked (skipped) tiles
                # so their DMAs are elided (same block index as previous step).
                pl.BlockSpec((1, t, head_size),
                             lambda h, qi, ki: (h, jnp.minimum(ki, qi), 0)),
                pl.BlockSpec((1, t, head_size),
                             lambda h, qi, ki: (h, jnp.minimum(ki, qi), 0)),
            ],
            out_specs=out_spec,
            scratch_shapes=[
                pltpu.VMEM((group * t, 1), jnp.float32),          # m
                pltpu.VMEM((group * t, 1), jnp.float32),          # l
                pltpu.VMEM((group * t, head_size), jnp.float32),  # acc
            ],
        ),
        compiler_params=pltpu.CompilerParams(
            dimension_semantics=("parallel", "parallel", "arbitrary"),
            vmem_limit_bytes=vmem_limit_bytes,
        ),
    )(q, k, v)

    if lane_dense:
        return out[:T]
    out = out.transpose(1, 0, 2).reshape(T_pad, num_heads * head_size)
    return out[:T]


def _reference(query, key, value, num_heads, num_kv_heads, head_size, scale):
    T = query.shape[0]
    q = query.reshape(T, num_heads, head_size).astype(jnp.float32)
    k = key.reshape(T, num_kv_heads, head_size).astype(jnp.float32)
    v = value.reshape(T, num_kv_heads, head_size).astype(jnp.float32)
    group = num_heads // num_kv_heads
    k = jnp.repeat(k, group, axis=1)
    v = jnp.repeat(v, group, axis=1)
    s = jnp.einsum("qhd,khd->hqk", q, k) * scale
    mask = jnp.tril(jnp.ones((T, T), dtype=bool))
    s = jnp.where(mask[None], s, -1e30)
    p = jax.nn.softmax(s, axis=-1)
    o = jnp.einsum("hqk,khd->qhd", p, v)
    return o.reshape(T, num_heads * head_size).astype(query.dtype)


def _run_case(seed, T, num_heads, num_kv_heads, head_size, dtype, block_size,
              atol, rtol):
    scale = head_size ** -0.5
    kq, kk, kv = jax.random.split(jax.random.PRNGKey(seed), 3)
    query = jax.random.normal(kq, (T, num_heads * head_size)).astype(dtype)
    key_t = jax.random.normal(kk, (T, num_kv_heads * head_size)).astype(dtype)
    value = jax.random.normal(kv, (T, num_kv_heads * head_size)).astype(dtype)

    out = attention_forward(query, key_t, value,
                            num_heads=num_heads,
                            num_kv_heads=num_kv_heads,
                            head_size=head_size,
                            scale=scale,
                            block_size=block_size)
    out = jax.block_until_ready(out)
    ref = _reference(query, key_t, value, num_heads, num_kv_heads,
                     head_size, scale)
    assert out.shape == (T, num_heads * head_size)
    assert jnp.allclose(out.astype(jnp.float32), ref.astype(jnp.float32),
                        atol=atol, rtol=rtol), (
        f"mismatch: T={T} H={num_heads} Hkv={num_kv_heads} dtype={dtype}")
    return out


if __name__ == "__main__":
    # A) main config: GQA, single tile, per-KV-head output layout (gD=64).
    _run_case(seed=0, T=16, num_heads=4, num_kv_heads=2, head_size=32,
              dtype=jnp.float32, block_size=128, atol=2e-3, rtol=2e-3)

    # B) MQA, multi-tile (3x3 grid): exercises online softmax, causal tile
    #    skip, diagonal-only masking and the lane-dense (group*D=128) output.
    _run_case(seed=1, T=48, num_heads=4, num_kv_heads=1, head_size=32,
              dtype=jnp.float32, block_size=16, atol=2e-3, rtol=2e-3)

    # C) non-divisible sequence length: exercises padding + masking of pads.
    _run_case(seed=2, T=20, num_heads=4, num_kv_heads=2, head_size=32,
              dtype=jnp.float32, block_size=16, atol=2e-3, rtol=2e-3)

    # D) bf16 activations (production dtype): native-dtype MXU path.
    _run_case(seed=3, T=48, num_heads=4, num_kv_heads=1, head_size=32,
              dtype=jnp.bfloat16, block_size=16, atol=6e-2, rtol=6e-2)

    print("KERNEL_OK")
</pallas_src>

<mosaic_0001>
module attributes {stable_mosaic.version = 11 : i64} {
  func.func @_flash_attn_kernel(%arg0: i32, %arg1: i32, %arg2: i32, %arg3: memref<1x2x16x32xf32, #tpu.memory_space<vmem>>, %arg4: memref<1x16x32xf32, #tpu.memory_space<vmem>>, %arg5: memref<1x16x32xf32, #tpu.memory_space<vmem>>, %arg6: memref<1x16x64xf32, #tpu.memory_space<vmem>>, %arg7: memref<32x1xf32, #tpu.memory_space<vmem>>, %arg8: memref<32x1xf32, #tpu.memory_space<vmem>>, %arg9: memref<32x32xf32, #tpu.memory_space<vmem>>) attributes {dimension_semantics = [#tpu.dimension_semantics<parallel>, #tpu.dimension_semantics<parallel>, #tpu.dimension_semantics<arbitrary>], iteration_bounds = array<i64: 2, 1, 1>, scalar_prefetch = 0 : i64, scratch_operands = 3 : i64, tpu.core_type = #tpu.core_type<tc>, window_params = [{transform_indices = @transform_0, window_bounds = array<i64: 1, 2, 16, 32>}, {transform_indices = @transform_1, window_bounds = array<i64: 1, 16, 32>}, {transform_indices = @transform_2, window_bounds = array<i64: 1, 16, 32>}, {transform_indices = @transform_3, window_bounds = array<i64: 1, 16, 64>}]} {
    %c0_i32 = arith.constant 0 : i32
    %0 = arith.cmpi eq, %arg2, %c0_i32 : i32
    %1 = arith.extui %0 : i1 to i32
    %c0_i32_0 = arith.constant 0 : i32
    %2 = arith.cmpi ne, %1, %c0_i32_0 : i32
    scf.if %2 {
      %cst = arith.constant 0xFF800000 : f32
      %9 = vector.broadcast %cst : f32 to vector<32x1xf32>
      %c0 = arith.constant 0 : index
      %c0_3 = arith.constant 0 : index
      %10 = vector.load %arg7[%c0, %c0_3] : memref<32x1xf32, #tpu.memory_space<vmem>>, vector<32x1xf32>
      tpu.vector_store %arg7[%c0, %c0_3], %9 {strides = array<i32>} : memref<32x1xf32, #tpu.memory_space<vmem>>, vector<32x1xf32>,
      %cst_4 = arith.constant 0.000000e+00 : f32
      %11 = vector.broadcast %cst_4 : f32 to vector<32x1xf32>
      %c0_5 = arith.constant 0 : index
      %c0_6 = arith.constant 0 : index
      %12 = vector.load %arg8[%c0_5, %c0_6] : memref<32x1xf32, #tpu.memory_space<vmem>>, vector<32x1xf32>
      tpu.vector_store %arg8[%c0_5, %c0_6], %11 {strides = array<i32>} : memref<32x1xf32, #tpu.memory_space<vmem>>, vector<32x1xf32>,
      %cst_7 = arith.constant 0.000000e+00 : f32
      %13 = vector.broadcast %cst_7 : f32 to vector<32x32xf32>
      %c0_8 = arith.constant 0 : index
      %c0_9 = arith.constant 0 : index
      %14 = vector.load %arg9[%c0_8, %c0_9] : memref<32x32xf32, #tpu.memory_space<vmem>>, vector<32x32xf32>
      tpu.vector_store %arg9[%c0_8, %c0_9], %13 {strides = array<i32>} : memref<32x32xf32, #tpu.memory_space<vmem>>, vector<32x32xf32>,
    } else {
    }
    %3 = arith.cmpi sle, %arg2, %arg1 : i32
    %4 = arith.extui %3 : i1 to i32
    %c0_i32_1 = arith.constant 0 : i32
    %5 = arith.cmpi ne, %4, %c0_i32_1 : i32
    scf.if %5 {
      %c0 = arith.constant 0 : index
      %c0_3 = arith.constant 0 : index
      %c0_4 = arith.constant 0 : index
      %c0_5 = arith.constant 0 : index
      %9 = vector.load %arg3[%c0, %c0_3, %c0_4, %c0_5] : memref<1x2x16x32xf32, #tpu.memory_space<vmem>>, vector<1x2x16x32xf32>
      %10 = vector.shape_cast %9 : vector<1x2x16x32xf32> to vector<2x16x32xf32>
      %cst = arith.constant 0.176776692 : f32
      %11 = vector.broadcast %cst : f32 to vector<2x16x32xf32>
      %12 = arith.mulf %10, %11 : vector<2x16x32xf32>
      %13 = vector.shape_cast %12 : vector<2x16x32xf32> to vector<32x32xf32>
      %c0_6 = arith.constant 0 : index
      %c0_7 = arith.constant 0 : index
      %c0_8 = arith.constant 0 : index
      %14 = vector.load %arg4[%c0_6, %c0_7, %c0_8] : memref<1x16x32xf32, #tpu.memory_space<vmem>>, vector<1x16x32xf32>
      %15 = vector.shape_cast %14 : vector<1x16x32xf32> to vector<16x32xf32>
      %c0_9 = arith.constant 0 : index
      %c0_10 = arith.constant 0 : index
      %c0_11 = arith.constant 0 : index
      %16 = vector.load %arg5[%c0_9, %c0_10, %c0_11] : memref<1x16x32xf32, #tpu.memory_space<vmem>>, vector<1x16x32xf32>
      %17 = vector.shape_cast %16 : vector<1x16x32xf32> to vector<16x32xf32>
      %cst_12 = arith.constant dense<0.000000e+00> : vector<32x16xf32>
      %18 = tpu.matmul %13, %15, %cst_12 {dimension_numbers = #tpu.dot_dimension_numbers<[1], [1], [0], [0], [0, 0, 1, 0], [], []>} : vector<32x32xf32>, vector<16x32xf32>, vector<32x16xf32> -> vector<32x16xf32>
      %19 = arith.cmpi eq, %arg2, %arg1 : i32
      %20 = arith.extui %19 : i1 to i32
      %c0_i32_13 = arith.constant 0 : i32
      %21 = arith.cmpi ne, %20, %c0_i32_13 : i32
      %22 = scf.if %21 -> (vector<32x16xf32>) {
        %45 = tpu.iota {dimensions = array<i32: 0>} : vector<32x16xi32>
        %46 = tpu.iota {dimensions = array<i32: 1>} : vector<32x16xi32>
        %c16_i32 = arith.constant 16 : i32
        %c0_i32_29 = arith.constant 0 : i32
        %47 = arith.cmpi eq, %c16_i32, %c0_i32_29 : i32
        %c1_i32 = arith.constant 1 : i32
        %48 = arith.select %47, %c1_i32, %c16_i32 : i32
        %49 = vector.broadcast %48 : i32 to vector<32x16xi32>
        %50 = arith.remsi %45, %49 : vector<32x16xi32>
        %c0_i32_30 = arith.constant 0 : i32
        %51 = vector.broadcast %c0_i32_30 : i32 to vector<32x16xi32>
        %52 = arith.cmpi ne, %50, %51 : vector<32x16xi32>
        %c0_i32_31 = arith.constant 0 : i32
        %53 = vector.broadcast %c0_i32_31 : i32 to vector<32x16xi32>
        %54 = arith.cmpi slt, %50, %53 : vector<32x16xi32>
        %c0_i32_32 = arith.constant 0 : i32
        %55 = arith.cmpi slt, %48, %c0_i32_32 : i32
        %56 = vector.broadcast %55 : i1 to vector<32x16xi1>
        %57 = vector.broadcast %56 : vector<32x16xi1> to vector<32x16xi1>
        %58 = arith.xori %54, %57 : vector<32x16xi1>
        %59 = arith.andi %58, %52 : vector<32x16xi1>
        %60 = vector.broadcast %48 : i32 to vector<32x16xi32>
        %61 = arith.addi %50, %60 : vector<32x16xi32>
        %62 = arith.select %59, %61, %50 : vector<32x16xi1>, vector<32x16xi32>
        %63 = arith.cmpi sle, %46, %62 : vector<32x16xi32>
        %cst_33 = arith.constant -1.000000e+30 : f32
        %64 = vector.broadcast %cst_33 : f32 to vector<32x16xf32>
        %65 = arith.select %63, %18, %64 : vector<32x16xi1>, vector<32x16xf32>
        scf.yield %65 : vector<32x16xf32>
      } else {
        scf.yield %18 : vector<32x16xf32>
      }
      %c0_14 = arith.constant 0 : index
      %c0_15 = arith.constant 0 : index
      %23 = vector.load %arg7[%c0_14, %c0_15] : memref<32x1xf32, #tpu.memory_space<vmem>>, vector<32x1xf32>
      %cst_16 = arith.constant dense<0xFF800000> : vector<32xf32>
      %24 = vector.multi_reduction <maximumf>, %22, %cst_16 [1] : vector<32x16xf32> to vector<32xf32>
      %25 = vector.shape_cast %24 : vector<32xf32> to vector<32x1xf32>
      %26 = arith.maximumf %23, %25 : vector<32x1xf32>
      %27 = arith.subf %23, %26 : vector<32x1xf32>
      %28 = math.exp %27 : vector<32x1xf32>
      %29 = vector.broadcast %26 : vector<32x1xf32> to vector<32x16xf32>
      %30 = arith.subf %22, %29 : vector<32x16xf32>
      %31 = math.exp %30 : vector<32x16xf32>
      %c0_17 = arith.constant 0 : index
      %c0_18 = arith.constant 0 : index
      %32 = vector.load %arg8[%c0_17, %c0_18] : memref<32x1xf32, #tpu.memory_space<vmem>>, vector<32x1xf32>
      %33 = arith.mulf %28, %32 : vector<32x1xf32>
      %cst_19 = arith.constant dense<0.000000e+00> : vector<32xf32>
      %34 = vector.multi_reduction <add>, %31, %cst_19 [1] : vector<32x16xf32> to vector<32xf32>
      %35 = vector.shape_cast %34 : vector<32xf32> to vector<32x1xf32>
      %36 = arith.addf %33, %35 : vector<32x1xf32>
      %c0_20 = arith.constant 0 : index
      %c0_21 = arith.constant 0 : index
      %37 = vector.load %arg8[%c0_20, %c0_21] : memref<32x1xf32, #tpu.memory_space<vmem>>, vector<32x1xf32>
      tpu.vector_store %arg8[%c0_20, %c0_21], %36 {strides = array<i32>} : memref<32x1xf32, #tpu.memory_space<vmem>>, vector<32x1xf32>,
      %c0_22 = arith.constant 0 : index
      %c0_23 = arith.constant 0 : index
      %38 = vector.load %arg9[%c0_22, %c0_23] : memref<32x32xf32, #tpu.memory_space<vmem>>, vector<32x32xf32>
      %39 = vector.broadcast %28 : vector<32x1xf32> to vector<32x32xf32>
      %40 = arith.mulf %39, %38 : vector<32x32xf32>
      %cst_24 = arith.constant dense<0.000000e+00> : vector<32x32xf32>
      %41 = tpu.matmul %31, %17, %cst_24 {dimension_numbers = #tpu.dot_dimension_numbers<[1], [0], [0], [1], [0, 0, 1, 1], [], []>} : vector<32x16xf32>, vector<16x32xf32>, vector<32x32xf32> -> vector<32x32xf32>
      %42 = arith.addf %40, %41 : vector<32x32xf32>
      %c0_25 = arith.constant 0 : index
      %c0_26 = arith.constant 0 : index
      %43 = vector.load %arg9[%c0_25, %c0_26] : memref<32x32xf32, #tpu.memory_space<vmem>>, vector<32x32xf32>
      tpu.vector_store %arg9[%c0_25, %c0_26], %42 {strides = array<i32>} : memref<32x32xf32, #tpu.memory_space<vmem>>, vector<32x32xf32>,
      %c0_27 = arith.constant 0 : index
      %c0_28 = arith.constant 0 : index
      %44 = vector.load %arg7[%c0_27, %c0_28] : memref<32x1xf32, #tpu.memory_space<vmem>>, vector<32x1xf32>
      tpu.vector_store %arg7[%c0_27, %c0_28], %26 {strides = array<i32>} : memref<32x1xf32, #tpu.memory_space<vmem>>, vector<32x1xf32>,
    } else {
    }
    %6 = arith.cmpi eq, %arg2, %arg1 : i32
    %7 = arith.extui %6 : i1 to i32
    %c0_i32_2 = arith.constant 0 : i32
    %8 = arith.cmpi ne, %7, %c0_i32_2 : i32
    scf.if %8 {
      %c0 = arith.constant 0 : index
      %c0_3 = arith.constant 0 : index
      %9 = vector.load %arg8[%c0, %c0_3] : memref<32x1xf32, #tpu.memory_space<vmem>>, vector<32x1xf32>
      %10 = tpu.reciprocal %9 {approx = true} : vector<32x1xf32> -> vector<32x1xf32>
      %c0_4 = arith.constant 0 : index
      %c0_5 = arith.constant 0 : index
      %11 = vector.load %arg9[%c0_4, %c0_5] : memref<32x32xf32, #tpu.memory_space<vmem>>, vector<32x32xf32>
      %12 = vector.broadcast %10 : vector<32x1xf32> to vector<32x32xf32>
      %13 = arith.mulf %11, %12 : vector<32x32xf32>
      %14 = vector.extract_strided_slice %13 {offsets = [0, 0], sizes = [16, 32], strides = [1, 1]} : vector<32x32xf32> to vector<16x32xf32>
      %c0_6 = arith.constant 0 : index
      %c0_7 = arith.constant 0 : index
      %c0_8 = arith.constant 0 : index
      %15 = vector.load %arg6[%c0_6, %c0_7, %c0_8] : memref<1x16x64xf32, #tpu.memory_space<vmem>>, vector<1x16x32xf32>
      %16 = vector.shape_cast %15 : vector<1x16x32xf32> to vector<16x32xf32>
      %17 = vector.shape_cast %14 : vector<16x32xf32> to vector<1x16x32xf32>
      tpu.vector_store %arg6[%c0_6, %c0_7, %c0_8], %17 {strides = array<i32>} : memref<1x16x64xf32, #tpu.memory_space<vmem>>, vector<1x16x32xf32>,
      %18 = vector.extract_strided_slice %13 {offsets = [16, 0], sizes = [16, 32], strides = [1, 1]} : vector<32x32xf32> to vector<16x32xf32>
      %c0_9 = arith.constant 0 : index
      %c0_10 = arith.constant 0 : index
      %c32 = arith.constant 32 : index
      %19 = vector.load %arg6[%c0_9, %c0_10, %c32] : memref<1x16x64xf32, #tpu.memory_space<vmem>>, vector<1x16x32xf32>
      %20 = vector.shape_cast %19 : vector<1x16x32xf32> to vector<16x32xf32>
      %21 = vector.shape_cast %18 : vector<16x32xf32> to vector<1x16x32xf32>
      tpu.vector_store %arg6[%c0_9, %c0_10, %c32], %21 {strides = array<i32>} : memref<1x16x64xf32, #tpu.memory_space<vmem>>, vector<1x16x32xf32>,
    } else {
    }
    return
  }
  func.func @transform_0(%arg0: i32, %arg1: i32, %arg2: i32) -> (i32, i32, i32, i32) {
    %c0_i32 = arith.constant 0 : i32
    %c0_i32_0 = arith.constant 0 : i32
    %c0_i32_1 = arith.constant 0 : i32
    return %arg0, %c0_i32, %arg1, %c0_i32_0 : i32, i32, i32, i32
  }
  func.func @transform_1(%arg0: i32, %arg1: i32, %arg2: i32) -> (i32, i32, i32) {
    %0 = arith.minsi %arg2, %arg1 : i32
    %c0_i32 = arith.constant 0 : i32
    %c0_i32_0 = arith.constant 0 : i32
    return %arg0, %0, %c0_i32 : i32, i32, i32
  }
  func.func @transform_2(%arg0: i32, %arg1: i32, %arg2: i32) -> (i32, i32, i32) {
    %0 = arith.minsi %arg2, %arg1 : i32
    %c0_i32 = arith.constant 0 : i32
    %c0_i32_0 = arith.constant 0 : i32
    return %arg0, %0, %c0_i32 : i32, i32, i32
  }
  func.func @transform_3(%arg0: i32, %arg1: i32, %arg2: i32) -> (i32, i32, i32) {
    %c0_i32 = arith.constant 0 : i32
    %c0_i32_0 = arith.constant 0 : i32
    return %arg0, %arg1, %c0_i32 : i32, i32, i32
  }
}

</mosaic_0001>

<bundles_post_ra>
// kernel: tpu_custom_call.1
= control target key start
LH: loop header
LB: loop body
LE: loop exit
PB: predicated region body
PF: predicated region fallthrough
CT: control target
= control target key end

     0   :  { %s1453_s0 = inlined_call_operand.hbm [shape: f32[2,2,16,32], index: 0, kind: input, shape index: {}]   ;;  %s1454_s1 = inlined_call_operand.hbm [shape: f32[2,16,32], index: 1, kind: input, shape index: {}]   ;;  %s1455_s2 = inlined_call_operand.hbm [shape: f32[2,16,32], index: 2, kind: input, shape index: {}]   ;;  %s1456_s3 = inlined_call_operand.hbm [shape: f32[2,16,64], index: 3, kind: output, shape index: {}]  }
   0x1   :  { %1459 = sst [smem:[#allocation18_spill]] %s1454_s1 }
   0x2   :  { %8 = vsyncpa [#allocation6], 0 }
   0x3   :  { %10 = vsyncpa [#allocation6 + $0x1], 0 }
   0x4   :  { %11 = vsyncpa [#allocation9], 0 }
   0x5   :  { %13 = vsyncpa [#allocation9 + $0x1], 0 }
   0x6   :  { %14 = vsyncpa [#allocation7], 0 }
   0x7   :  { %16 = vsyncpa [#allocation7 + $0x1], 0  ;;  %s1225_s12 = smov 0   ;;  %s1227_s13 = smov 0  }
   0x8   :  { %s1229_s14 = smov 0   ;;  %s1231_s15 = smov 0  }
   0x9   :  { %s1233_s16 = smov 0   ;;  %s1235_s17 = smov 0  }
   0xa LB: > { %1460 = sst [smem:[#allocation15_spill]] %s1183_s14  ;;  %s1256_s18 = sadd.s32 4294967295, %s1195_s17   ;;  %s1195_s17 = sphi %s1235_s17, %s22_s17   ;;  %s1191_s16 = sphi %s1233_s16, %s1475_s16   ;;  %s1187_s15 = sphi %s1231_s15, %s1474_s15   ;;  %s1183_s14 = sphi %s1229_s14, %s1470_s14   ;;  %s1179_s13 = sphi %s1227_s13, %s1473_s13   ;;  %s1175_s12 = sphi %s1225_s12, %s1472_s12  }
   0xb   : > { %s872_s19 = sadd.s32 4294967294, %s1195_s17   ;;  %s41_s20 = sadd.s32 1, %s1191_s16 }
   0xc   : > { %s50_s21 = sadd.s32 1, %s1183_s14  ;;  %p43_p0 = scmp.ge.s32.totalorder %s41_s20, 2 }
   0xd   : > { %p57_p1 = scmp.ne.s32.totalorder %s1183_s14, %s1179_s13  ;;  %p58_p2 = scmp.eq.s32.totalorder %s1195_s17, 0 }
   0xe   : > { %p63_p3 = scmp.ne.s32.totalorder %s1179_s13, %s1175_s12  ;;  %s1477_s20 = smov (%p43_p0, %s41_s20), 0 }
   0xf   : > { %1461 = sst [smem:[#allocation16_spill]] %s1477_s20  ;;  %p1268_p4 = por %p58_p2, %p57_p1 }
  0x10   : > { %p64_p5 = scmp.eq.s32.totalorder %s1256_s18, 0  ;;  %s45_s23 = ssub.s32 %s1191_s16, %s1477_s20 }
  0x11   : > { %p153_p6 = scmp.eq.s32.totalorder %s1256_s18, 1  ;;  %p48_p7 = scmp.eq.s32.totalorder %s45_s23, 0 }
  0x12   : > { %p1276_p8 = por %p64_p5, %p63_p3  ;;  %p159_p10 = scmp.eq.s32.totalorder %s872_s19, 1 }
  0x13   : > { %p1280_p9 = por %p153_p6, %p57_p1  ;;  %p874_p12 = scmp.ge.s32.totalorder %s1195_s17, 2 }
  0x14   : > { %s1285_s26 = scalar_select %p48_p7, %s1183_s14, %s50_s21  }
  0x15   : > { %p1287_p11 = por %p159_p10, %p63_p3  ;;  %p934_p13 = scmp.lt.s32.totalorder %s1195_s17, 2 }
  0x16   : > { %1465 = sst [smem:[#allocation17_spill]] %s1285_s26  ;;  %s1294_s28 = sand.u32 1, %s1183_s14  }
  0x17   : > { %p1298_p0 = pnand %p934_p13, %p1268_p4  ;;  %s203_s30 = sand.u32 1, %s1195_s17  }
  0x18   : > { %s878_s4 = sshll.u32 %s1294_s28, 4  ;;  %s905_s5 = sshll.u32 %s1191_s16, 4 }
  0x19   : > { %s207_s6 = scalar_lea.vmem [#allocation8], %s878_s4  ;;  %s1468_s1 = sld [smem:[#allocation18_spill]] }
  0x1a   : > { %s219_s7 = sshll.u32 %s207_s6, 4  ;;  %s242_s22 = scalar_lea.hbm %s1455_s2, %s905_s5  ;;  %s220_s7 = int_to_ptr.vmem [resolvable:$true] %s219_s7 }
  0x1b   : > { %s204_s23 = scalar_lea.sflag [#allocation9], %s203_s30  ;;  %s1197_s20 = smov 128  }
  0x1c   : > { %s1198_s26 = smov 8   ;;  %s243_s6 = sshll.u32 %s242_s22, 4  ;;  %s244_s6 = int_to_ptr.hbm [resolvable:$true] %s243_s6 }
  0x1d   : > { %s233_s14 = scalar_lea.vmem [#allocation10], %s878_s4  ;;  %p884_p1 = scmp.ge.s32.totalorder %s1195_s17, 1 }
  0x1e   : > { %s245_s8 = sshll.u32 %s233_s14, 4  ;;  %p253_p2 = scmp.lt.s32.totalorder %s1195_s17, 3  ;;  %s246_s8 = int_to_ptr.vmem [resolvable:$true] %s245_s8 }
  0x1f   : > { %s216_s10 = scalar_lea.hbm %s1468_s1, %s905_s5  ;;  %s875_s9 = sshll.u32 %s1294_s28, 5 }
  0x20   : > { %s217_s11 = sshll.u32 %s216_s10, 4  ;;  %p254_p3 = pnand %p884_p1, %p253_p2  ;;  %s218_s11 = int_to_ptr.hbm [resolvable:$true] %s217_s11 }
  0x21   : > { %926 = dma.hbm_to_vmem [thread:$0]  (!%p1298_p0), %s218_s11, 256, %s220_s7, %s204_s23, %s1197_s20, %s1197_s20, %s1198_s26  }
  0x22   : > { %s904_s10 = sshll.u32 %s1191_s16, 5  ;;  %s183_s1 = scalar_lea.vmem [#allocation5], %s875_s9 }
  0x23   : > { %s190_s30 = scalar_lea.hbm %s1453_s0, %s904_s10  ;;  %s193_s7 = sshll.u32 %s183_s1, 4  ;;  %s194_s7 = int_to_ptr.vmem [resolvable:$true] %s193_s7 }
  0x24   : > { %s191_s21 = sshll.u32 %s190_s30, 4  ;;  %s180_s4 = scalar_lea.sflag [#allocation6], %s1294_s28  ;;  %s192_s21 = int_to_ptr.hbm [resolvable:$true] %s191_s21 }
  0x25   : > { %923 = dma.hbm_to_vmem [thread:$0]  (!%p1298_p0), %s192_s21, 512, %s194_s7, %s180_s4, %s1197_s20, %s1197_s20, %s1198_s26  }
  0x26   : > { %929 = dma.hbm_to_vmem [thread:$0]  (!%p1298_p0), %s244_s6, 256, %s246_s8, %s204_s23, %s1197_s20, %s1197_s20, %s1198_s26  }
  0x27   : > { %257 = sbr.rel (%p254_p3) target bundleno = 798 (0x31e), region = 32  ;;  %s1326_s14 = sand.u32 (!%p254_p3), 1, %s1179_s13  }
  0x28   : > { %s885_s11 = sshll.u32 (!%p254_p3), %s1326_s14, 5  ;;  %s260_s22 = scalar_lea.sflag (!%p254_p3), [#allocation6], %s1326_s14 }
  0x29   : > { %s263_s10 = scalar_lea.vmem (!%p254_p3), [#allocation5], %s885_s11 }
  0x2c   : > { %1162 = dma.done.wait (%p1276_p8), %s260_s22, 512  }
  0x2d   : > { %1164 = vsyncadd (%p1276_p8), %s260_s22, 4294966784  ;;  %s269_s1 = sand.u32 1, %s1256_s18   ;;  %s1336_s20 = sshll.u32 %s1326_s14, 4 }
  0x2e   : > { %s270_s26 = scalar_lea.sflag [#allocation9], %s269_s1  ;;  %s273_s28 = scalar_lea.vmem [#allocation8], %s1336_s20 }
  0x2f   : > { %1166 = dma.done.wait (%p1276_p8), %s270_s26, 512  }
  0x30   : > { %1168 = vsyncadd (%p1276_p8), %s270_s26, 4294966784  ;;  %vm338_vm0 = vcmask 261120   ;;  %v356_v0 = vld [vmem:[%s273_s28 + $0x8] sm:$0xff]  ;;  %v347_v1 = vld [vmem:[%s263_s10] sm:$0xff]  ;;  %v411_v10 = vlaneseq  ;;  %vm329_vm1 = vcmask 7168   ;;  %v1199_v12 = vmov -inf  }
  0x31   : > { %889 = vmatpush.xpose.msk.msra.mxu0 %vm338_vm0, %v356_v0  ;;  %908 = vmatpush.xpose.msk.msra.mxu2 %vm338_vm0, %v356_v0  ;;  %v349_v2 = vld [vmem:[%s263_s10 + $0x10] sm:$0xff]  ;;  %v351_v4 = vmul.f32 0.17677669, %v347_v1  ;;  %v348_v6 = vld [vmem:[%s263_s10 + $0x8] sm:$0xff]  ;;  %v350_v7 = vld [vmem:[%s263_s10 + $0x18] sm:$0xff]  ;;  %331 = vst.msk [vmem:[#allocation2 + $0x8] sm:$0xff] %vm329_vm1, %v1199_v12 }
  0x32   : > { %v355_v3 = vld [vmem:[%s273_s28] sm:$0xff]  ;;  %v353_v5 = vmul.f32 0.17677669, %v349_v2  ;;  %v352_v8 = vmul.f32 0.17677669, %v348_v6  ;;  %v412_v11 = vshrl.u32 %v411_v10, 7 }
  0x33   : > { %v354_v9 = vmul.f32 0.17677669, %v350_v7  ;;  %330 = vst.msk [vmem:[#allocation2] sm:$0xff] %vm329_vm1, %v1199_v12  ;;  %v417_v17 = vand.u32 127, %v411_v10  ;;  %vm489_vm3 = vcmask 130048   ;;  %v1200_v33 = vmov 0  }
  0x34   : > { %v413_v13 = vadd.s32 8, %v412_v11  ;;  %332 = vst.msk [vmem:[#allocation2 + $0x10] sm:$0xff] %vm329_vm1, %v1199_v12  ;;  %v414_v16 = vadd.s32 16, %v412_v11  ;;  %v415_v18 = vadd.s32 24, %v412_v11  ;;  %v422_v28 = vand.u32 15, %v412_v11  ;;  %992 = vset.pattern.permute.xlu1 %v1200_v33  ;;  %993 = vset.pattern.permute.xlu2 %v1200_v33  ;;  %s283_s18 = scalar_lea.vmem [#allocation10], %s1336_s20 }
  0x35   : > { %890 = vmatpush.xpose.msk.msra.mxu0 %vm338_vm0, %v355_v3  ;;  %909 = vmatpush.xpose.msk.msra.mxu2 %vm338_vm0, %v355_v3  ;;  %333 = vst.msk [vmem:[#allocation2 + $0x18] sm:$0xff] %vm329_vm1, %v1199_v12  ;;  %v1201_v34 = vmov 0.0   ;;  %v358_v51 = vld [vmem:[%s283_s18 + $0x8] sm:$0xff]  ;;  %v357_v52 = vld [vmem:[%s283_s18] sm:$0xff]  ;;  %s1405_s24 = scalar_lea.vmem [#allocation11], %s1336_s20  ;;  %s1202_s29 = smov 32  }
  0x36   : > { %v429_v15 = vand.u32 15, %v413_v13  ;;  %v436_v20 = vand.u32 15, %v414_v16  ;;  %v443_v22 = vand.u32 15, %v415_v18  ;;  %vm466_vm6 = vcmp.le.s32.totalorder %v417_v17, %v422_v28  ;;  %994 = vset.pattern.permute.xlu0 %v1200_v33  ;;  %336 = vst.msk [vmem:[#allocation3 + $0x10] sm:$0xff] %vm329_vm1, %v1201_v34  ;;  %633 = vmatpush.msra.mxu1 %v358_v51  ;;  %s907_s23 = sshll.u32 %s1187_s15, 4  ;;  %s729_s19 = sshll.u32 %s1405_s24, 4  ;;  %s730_s19 = int_to_ptr.vmem [resolvable:$true] %s729_s19 }
  0x37   : > { %334 = vst.msk [vmem:[#allocation3] sm:$0xff] %vm329_vm1, %v1201_v34  ;;  %910 = vmatpush.msra.mxu3 %v358_v51  ;;  %vm711_vm7 = vcmask 523520   ;;  %s728_s9 = scalar_lea.hbm %s1456_s3, %s907_s23  ;;  %s715_s30 = scalar_lea.sflag [#allocation7], %s1326_s14 }
  0x38   : > { %891 = vmatmul.msk.f32.vlgmr.msra.gmra.mxu0 %vm338_vm0, %v351_v4  ;;  %893 = vmatmul.msk.f32.vlgmr.msra.gmra.mxu2 %vm338_vm0, %v353_v5  ;;  %vm467_vm2 = vcmp.le.s32.totalorder %v417_v17, %v429_v15  ;;  %vm468_vm4 = vcmp.le.s32.totalorder %v417_v17, %v436_v20  ;;  %vm469_vm5 = vcmp.le.s32.totalorder %v417_v17, %v443_v22  ;;  %v1373_v35 = vld [vmem:[#allocation2 + $0x8] sm:$0xff]  ;;  %s731_s5 = sshll.u32 %s728_s9, 4  ;;  %s1129_s11 = scalar_lea.hbm %s1456_s3, 32  ;;  %s732_s5 = int_to_ptr.hbm [resolvable:$true] %s731_s5 }
  0x39   : > { %335 = vst.msk [vmem:[#allocation3 + $0x8] sm:$0xff] %vm329_vm1, %v1201_v34  ;;  %634 = vmatpush.msra.mxu1 %v357_v52  ;;  %911 = vmatpush.msra.mxu3 %v357_v52  ;;  %s1123_s21 = sshra.s32 %s732_s5, 4  ;;  %s1124_s21 = int_to_ptr.hbm [resolvable:$true] %s1123_s21 }
  0x3a   : > { %337 = vst.msk [vmem:[#allocation3 + $0x18] sm:$0xff] %vm329_vm1, %v1201_v34  ;;  %v485_v47 = vld [vmem:[#allocation2] sm:$0xff]  ;;  %s1125_s7 = scalar_lea.hbm %s1124_s21, 16  ;;  %p1130_p7 = scmp.lt.s32.totalorder %s1124_s21, %s1456_s3 }
  0x3b   : > { %339 = vst.msk [vmem:[#allocation4] sm:$0xff] %vm338_vm0, %v1201_v34  ;;  %v487_v40 = vld [vmem:[#allocation2 + $0x10] sm:$0xff]  ;;  %p1126_p4 = scmp.ne.s32.totalorder %s1124_s21, %s1125_s7  ;;  %p1131_p8 = scmp.lt.s32.totalorder %s1129_s11, %s1125_s7 }
  0x3c   : > { %340 = vst.msk [vmem:[#allocation4 + $0x8] sm:$0xff] %vm338_vm0, %v1201_v34  ;;  %v488_v39 = vld [vmem:[#allocation2 + $0x18] sm:$0xff] }
  0x3d   : > { %341 = vst.msk [vmem:[#allocation4 + $0x10] sm:$0xff] %vm338_vm0, %v1201_v34  ;;  %v552_v15 = vld [vmem:[#allocation3 + $0x10] sm:$0xff]  ;;  %p1127_p5 = pnand %p1126_p4, %p1280_p9  ;;  %p1132_p10 = por %p1131_p8, %p1130_p7 }
  0x3e   : > { %342 = vst.msk [vmem:[#allocation4 + $0x18] sm:$0xff] %vm338_vm0, %v1201_v34 }
  0x3f   : > { %p1128_p6 = pneg %p1127_p5 }
  0x40   : > { %892 = vmatmul.msk.f32.gmra.mxu0 %vm338_vm0, %v352_v8  ;;  %894 = vmatmul.msk.f32.gmra.mxu2 %vm338_vm0, %v354_v9 }
  0x41   : > { %v553_v20 = vld [vmem:[#allocation3 + $0x18] sm:$0xff]  ;;  %p1133_p13 = pnand %p1132_p10, %p1128_p6 }
  0x45   : > { %v582_v52 = vld [vmem:[#allocation4 + $0x18] sm:$0xff] }
  0xb5   : > { %v395_v14 = vpop.f32.mrf.mxu0 }
  0xb6   : > { %v1361_v31 = vsel %vm466_vm6, %v395_v14, -1e+30 }
  0xb7   : > { %v490_v32 = vsel %vm489_vm3, %v1361_v31, -inf }
  0xbb   : > { %v401_v19 = vpop.f32.mrf.mxu2 }
  0xbc   : > { %v472_v25 = vsel %vm468_vm4, %v401_v19, -1e+30 }
  0xbd   : > { %v398_v21 = vpop.f32.mrf.mxu0  ;;  %v496_v29 = vsel %vm489_vm3, %v472_v25, -inf }
  0xbe   : > { %v1355_v23 = vsel %vm467_vm2, %v398_v21, -1e+30 }
  0xbf   : > { %v493_v24 = vsel %vm489_vm3, %v1355_v23, -inf }
  0xc0   : > { %494 = vmax.xlane.f32.xlu0 %v493_v24 }
  0xc3   : > { %v404_v26 = vpop.f32.mrf.mxu2 }
  0xc4   : > { %v473_v27 = vsel %vm469_vm5, %v404_v26, -1e+30 }
  0xc5   : > { %v499_v30 = vsel %vm489_vm3, %v473_v27, -inf }
  0xc6   : > { %500 = vmax.xlane.f32.xlu1 %v499_v30 }
  0xc8   : > { %497 = vmax.xlane.f32.xlu0 %v496_v29 }
  0xd0   : > { %491 = vmax.xlane.f32.xlu0 %v490_v32 }
 0x133   : > { %v495_v36 = vpop.xlane.xlu0 %494 }
 0x134   : > { %v1376_v37 = vmax.f32 %v1373_v35, %v495_v36 }
 0x136   : > { %v507_v38 = vsub.f32 %v1373_v35, %v1376_v37  ;;  %657 = vst.msk [vmem:[#allocation2 + $0x8] sm:$0xff] %vm329_vm1, %v1376_v37  ;;  %525 = vperm.xlu1 %992, %v1376_v37  }
 0x138   : > { %v512_v11 = vmul.f32 1.442695, %v507_v38 }
 0x139   : > { %v501_v41 = vpop.xlane.xlu1 %500 }
 0x13a   : > { %v505_v42 = vmax.f32 %v488_v39, %v501_v41 }
 0x13b   : > { %v498_v43 = vpop.xlane.xlu0 %497 }
 0x13c   : > { %v504_v44 = vmax.f32 %v487_v40, %v498_v43  ;;  %v509_v45 = vsub.f32 %v488_v39, %v505_v42  ;;  %659 = vst.msk [vmem:[#allocation2 + $0x18] sm:$0xff] %vm329_vm1, %v505_v42  ;;  %v580_v39 = vld [vmem:[#allocation4 + $0x8] sm:$0xff] }
 0x13e   : > { %v508_v46 = vsub.f32 %v487_v40, %v504_v44  ;;  %658 = vst.msk [vmem:[#allocation2 + $0x10] sm:$0xff] %vm329_vm1, %v504_v44  ;;  %530 = vperm.xlu2 %993, %v504_v44   ;;  %v516_v9 = vmul.f32 1.442695, %v509_v45 }
 0x140   : > { %v514_v10 = vmul.f32 1.442695, %v508_v46  ;;  %v581_v46 = vld [vmem:[#allocation4 + $0x10] sm:$0xff] }
 0x143   : > { %v492_v48 = vpop.xlane.xlu0 %491 }
 0x144   : > { %v502_v49 = vmax.f32 %v485_v47, %v492_v48 }
 0x146   : > { %v506_v50 = vsub.f32 %v485_v47, %v502_v49  ;;  %656 = vst.msk [vmem:[#allocation2] sm:$0xff] %vm329_vm1, %v502_v49  ;;  %535 = vperm.xlu2 %993, %v505_v42  }
 0x148   : > { %v510_v19 = vmul.f32 1.442695, %v506_v50 }
 0x14e   : > { %520 = vperm.xlu2 %993, %v502_v49  }
 0x198   : > { %v531_v53 = vpop.permute.xlu2 %530 }
 0x199   : > { %v540_v54 = vsub.f32 %v472_v25, %v531_v53  ;;  %v551_v25 = vld [vmem:[#allocation3 + $0x8] sm:$0xff] }
 0x19b   : > { %v546_v55 = vmul.f32 1.442695, %v540_v54 }
 0x19d   : > { %995 = vpow2.f32 %v546_v55 }
 0x1a0   : > { %v536_v56 = vpop.permute.xlu2 %535 }
 0x1a1   : > { %v541_v57 = vsub.f32 %v473_v27, %v536_v56  ;;  %v550_v27 = vld [vmem:[#allocation3] sm:$0xff] }
 0x1a3   : > { %v996_v58 = vpop.eup %995  ;;  %v548_v59 = vmul.f32 1.442695, %v541_v57 }
 0x1a4   : > { %v564_v60 = vsel %vm489_vm3, %v996_v58, 0.0 }
 0x1a5   : > { %997 = vpow2.f32 %v548_v59  ;;  %565 = vadd.xlane.f32.xlu0 %v564_v60 }
 0x1a8   : > { %v526_v61 = vpop.permute.xlu1 %525  ;;  %v521_v62 = vpop.permute.xlu2 %520 }
 0x1a9   : > { %v539_v63 = vsub.f32 %v1355_v23, %v526_v61  ;;  %v538_v0 = vsub.f32 %v1361_v31, %v521_v62 }
 0x1ab   : > { %v998_v1 = vpop.eup %997  ;;  %v544_v2 = vmul.f32 1.442695, %v539_v63  ;;  %v542_v3 = vmul.f32 1.442695, %v538_v0 }
 0x1ac   : > { %v567_v4 = vsel %vm489_vm3, %v998_v1, 0.0 }
 0x1ad   : > { %999 = vpow2.f32 %v544_v2  ;;  %568 = vadd.xlane.f32.xlu2 %v567_v4 }
 0x1ae   : > { %1001 = vpow2.f32 %v542_v3 }
 0x1af   : > { %1003 = vpow2.f32 %v516_v9 }
 0x1b0   : > { %1005 = vpow2.f32 %v514_v10 }
 0x1b1   : > { %1007 = vpow2.f32 %v512_v11 }
 0x1b2   : > { %1009 = vpow2.f32 %v510_v19 }
 0x1b3   : > { %v1000_v5 = vpop.eup %999 }
 0x1b4   : > { %v1002_v6 = vpop.eup %1001  ;;  %896 = vmatmul.msk.f32.vlgmr.msra.gmra.mxu3 %vm489_vm3, %v1000_v5  ;;  %v561_v7 = vsel %vm489_vm3, %v1000_v5, 0.0 }
 0x1b5   : > { %895 = vmatmul.msk.f32.vlgmr.msra.gmra.mxu1 %vm489_vm3, %v1002_v6  ;;  %562 = vadd.xlane.f32.xlu1 %v561_v7  ;;  %v558_v8 = vsel %vm489_vm3, %v1002_v6, 0.0  ;;  %v1004_v12 = vpop.eup %1003 }
 0x1b6   : > { %559 = vadd.xlane.f32.xlu0 %v558_v8  ;;  %v1006_v13 = vpop.eup %1005  ;;  %v557_v21 = vmul.f32 %v1004_v12, %v553_v20 }
 0x1b7   : > { %v1008_v14 = vpop.eup %1007  ;;  %v556_v16 = vmul.f32 %v1006_v13, %v552_v15 }
 0x1b8   : > { %v1010_v26 = vpop.eup %1009  ;;  %v555_v28 = vmul.f32 %v1008_v14, %v551_v25 }
 0x1b9   : > { %v554_v30 = vmul.f32 %v1010_v26, %v550_v27 }
 0x1bc   : > { %897 = vmatmul.msk.f32.gmra.mxu3 %vm489_vm3, %v996_v58 }
 0x1c4   : > { %898 = vmatmul.msk.f32.gmra.mxu3 %vm489_vm3, %v998_v1  ;;  %v579_v1 = vld [vmem:[#allocation4] sm:$0xff] }
 0x1c5   : > { %600 = vperm.xlu2 %993, %v1004_v12  }
 0x1ca   : > { %595 = vperm.xlu0 %994, %v1006_v13  }
 0x1cd   : > { %590 = vperm.xlu2 %993, %v1008_v14  }
 0x218   : > { %v566_v17 = vpop.xlane.xlu0 %565 }
 0x219   : > { %v572_v18 = vadd.f32 %v566_v17, %v556_v16 }
 0x21b   : > { %577 = vst.msk [vmem:[#allocation3 + $0x10] sm:$0xff] %vm329_vm1, %v572_v18 }
 0x220   : > { %v569_v22 = vpop.xlane.xlu2 %568 }
 0x221   : > { %v573_v23 = vadd.f32 %v569_v22, %v557_v21 }
 0x222   : > { %v666_v24 = vld [vmem:[#allocation3 + $0x10] sm:$0xff] }
 0x223   : > { %578 = vst.msk [vmem:[#allocation3 + $0x18] sm:$0xff] %vm329_vm1, %v573_v23  ;;  %1011 = vrcp.f32 %v666_v24 }
 0x228   : > { %v563_v29 = vpop.xlane.xlu1 %562  ;;  %v601_v34 = vpop.permute.xlu2 %600 }
 0x229   : > { %v1012_v31 = vpop.eup %1011  ;;  %v571_v32 = vadd.f32 %v563_v29, %v555_v28  ;;  %v560_v33 = vpop.xlane.xlu0 %559  ;;  %v606_v53 = vmul.f32 %v601_v34, %v582_v52 }
 0x22a   : > { %v570_v35 = vadd.f32 %v560_v33, %v554_v30  ;;  %688 = vperm.xlu1 %992, %v1012_v31   ;;  %v667_v36 = vld [vmem:[#allocation3 + $0x18] sm:$0xff] }
 0x22b   : > { %576 = vst.msk [vmem:[#allocation3 + $0x8] sm:$0xff] %vm329_vm1, %v571_v32  ;;  %1013 = vrcp.f32 %v667_v36 }
 0x22c   : > { %575 = vst.msk [vmem:[#allocation3] sm:$0xff] %vm329_vm1, %v570_v35 }
 0x230   : > { %v591_v40 = vpop.permute.xlu2 %590 }
 0x231   : > { %v1014_v37 = vpop.eup %1013  ;;  %v604_v41 = vmul.f32 %v591_v40, %v580_v39 }
 0x232   : > { %693 = vperm.xlu0 %994, %v1014_v37   ;;  %v665_v38 = vld [vmem:[#allocation3 + $0x8] sm:$0xff]  ;;  %v636_v4 = vpop.f32.mrf.mxu1 }
 0x233   : > { %1015 = vrcp.f32 %v665_v38  ;;  %v664_v44 = vld [vmem:[#allocation3] sm:$0xff] }
 0x234   : > { %1017 = vrcp.f32 %v664_v44 }
 0x237   : > { %v639_v42 = vpop.f32.mrf.mxu3 }
 0x238   : > { %v649_v43 = vadd.f32 %v639_v42, %v604_v41 }
 0x239   : > { %v1016_v45 = vpop.eup %1015 }
 0x23a   : > { %653 = vst.msk [vmem:[#allocation4 + $0x8] sm:$0xff] %vm338_vm0, %v649_v43  ;;  %683 = vperm.xlu2 %993, %v1016_v45   ;;  %585 = vperm.xlu0 %994, %v1010_v26   ;;  %v1018_v51 = vpop.eup %1017 }
 0x23c   : > { %v596_v47 = vpop.permute.xlu0 %595 }
 0x23d   : > { %v605_v48 = vmul.f32 %v596_v47, %v581_v46 }
 0x23f   : > { %v642_v49 = vpop.f32.mrf.mxu3 }
 0x240   : > { %v650_v50 = vadd.f32 %v642_v49, %v605_v48 }
 0x241   : > { %v673_v56 = vld [vmem:[#allocation4 + $0x8] sm:$0xff] }
 0x242   : > { %654 = vst.msk [vmem:[#allocation4 + $0x10] sm:$0xff] %vm338_vm0, %v650_v50  ;;  %678 = vperm.xlu0 %994, %v1018_v51  }
 0x247   : > { %v645_v54 = vpop.f32.mrf.mxu3 }
 0x248   : > { %v651_v55 = vadd.f32 %v645_v54, %v606_v53 }
 0x249   : > { %v674_v60 = vld [vmem:[#allocation4 + $0x10] sm:$0xff] }
 0x24a   : > { %655 = vst.msk [vmem:[#allocation4 + $0x18] sm:$0xff] %vm338_vm0, %v651_v55 }
 0x251   : > { %v675_v63 = vld [vmem:[#allocation4 + $0x18] sm:$0xff] }
 0x294   : > { %v684_v57 = vpop.permute.xlu2 %683 }
 0x295   : > { %v697_v58 = vmul.f32 %v684_v57, %v673_v56 }
 0x297   : > { %702 = vst.msk [vmem:[%s1405_s24 + $0x8] sm:$0xff] %vm338_vm0, %v697_v58 }
 0x29c   : > { %v689_v59 = vpop.permute.xlu1 %688 }
 0x29d   : > { %v698_v61 = vmul.f32 %v689_v59, %v674_v60 }
 0x29f   : > { %705 = vrot.lane.b32.xlu1 %v698_v61, %s1202_s29 }
 0x2a4   : > { %v694_v62 = vpop.permute.xlu0 %693 }
 0x2a5   : > { %v699_v0 = vmul.f32 %v694_v62, %v675_v63 }
 0x2a7   : > { %707 = vrot.lane.b32.xlu0 %v699_v0, %s1202_s29 }
 0x2ac   : > { %v586_v2 = vpop.permute.xlu0 %585 }
 0x2ad   : > { %v603_v3 = vmul.f32 %v586_v2, %v579_v1 }
 0x2af   : > { %v648_v5 = vadd.f32 %v636_v4, %v603_v3 }
 0x2b1   : > { %652 = vst.msk [vmem:[#allocation4] sm:$0xff] %vm338_vm0, %v648_v5 }
 0x2b4   : > { %v679_v7 = vpop.permute.xlu0 %678 }
 0x2b8   : > { %v672_v6 = vld [vmem:[#allocation4] sm:$0xff] }
 0x2b9   : > { %v696_v8 = vmul.f32 %v679_v7, %v672_v6 }
 0x2bb   : > { %701 = vst.msk [vmem:[%s1405_s24] sm:$0xff] %vm338_vm0, %v696_v8 }
 0x311   : > { %v706_v9 = vpop.permute.xlu1 %705 }
 0x312   : > { %712 = vst.msk [vmem:[%s1405_s24] sm:$0xff] %vm711_vm7, %v706_v9 }
 0x319   : > { %v708_v10 = vpop.permute.xlu0 %707 }
 0x31a   : > { %713 = vst.msk [vmem:[%s1405_s24 + $0x8] sm:$0xff] %vm711_vm7, %v708_v10 }
 0x31b   : > { %1136 = shalt.err (!%p1133_p13)
}
 0x31c   : > { %s1203_s14 = smov 128   ;;  %s1204_s1 = smov 8  }
 0x31d   : > { %918 = dma.vmem_to_hbm [thread:$0]  (%p1280_p9), %s730_s19, 256, %s732_s5, %s715_s30, %s1203_s14, %s1203_s14, %s1204_s1  }
 0x31e PF: > { %s746_s20 = sand.u32 1, %s1175_s12   ;;  %p931_p0 = pnand %p874_p12, %p1287_p11 }
 0x31f   : > { %s747_s26 = scalar_lea.sflag [#allocation7], %s746_s20 }
 0x320   : > { %p932_p1 = pneg %p931_p0 }
 0x322   : > { %1170 = dma.done.wait (%p932_p1), %s747_s26, 256  }
 0x323   : > { %1172 = vsyncadd (%p932_p1), %s747_s26, 4294967040  ;;  %s22_s17 = sadd.s32 1, %s1195_s17   ;;  %s1469_s28 = sld [smem:[#allocation15_spill]] }
 0x324   : > { %p19_p2 = scmp.ge.s32.totalorder %s22_s17, 4   ;;  %s1470_s14 = sld [smem:[#allocation17_spill]] }
 0x325   : > { %s1471_s25 = sld [smem:[#allocation16_spill]]  ;;  %s1472_s12 = smov %s1179_s13 }
 0x326   : > { %s1474_s15 = smov %s1191_s16 }
 0x327   :  { %21 = sbr.rel (!%p19_p2) target bundleno = 10 (0xa), region = 121 }
 0x329   : > { %s1473_s13 = smov %s1469_s28 }
 0x32b   : > { %s1475_s16 = smov %s1471_s25 }
 0x32c   :  { %753 = vsyncpa [#allocation6], 1 }
 0x32d   :  { %755 = vsyncpa [#allocation6 + $0x1], 1 }
 0x32e   :  { %756 = vsyncpa [#allocation9], 1 }
 0x32f   :  { %758 = vsyncpa [#allocation9 + $0x1], 1 }
 0x330   :  { %759 = vsyncpa [#allocation7], 1 }
 0x331   :  { %761 = vsyncpa [#allocation7 + $0x1], 1 }

</bundles_post_ra>
